<compile_context>
chip_gen: v7x
topology: tpu7x:2x2x1
jax: 0.10.0
libtpu: 0.0.40
codegen_flags: <defaults>
</compile_context>

<pallas_src>
import functools

import jax
import jax.numpy as jnp
from jax import lax
from jax.experimental import pallas as pl
from jax.experimental.pallas import tpu as pltpu


# Raise scoped VMEM above the 16/32 MiB defaults but stay v7x-safe (64 MiB phys).
_VMEM_LIMIT = 48 * 1024 * 1024


# ----------------------------------------------------------------------------
# Pallas kernel 1: MaskedConv1D (stride=1) * mask, then ReLU  (the `embd` stage)
# Fused im2col: one (T, K*Cin) @ (K*Cin, Cout) bf16 MXU matmul.
# ----------------------------------------------------------------------------
def _masked_conv_relu_kernel(x_ref, m_ref, w_ref, b_ref, o_ref, xp_scr, *, K, T, pad):
    cin = x_ref.shape[2]
    # Build the zero-padded copy in VMEM (no HBM jnp.pad round trip).
    if pad > 0:
        z = jnp.zeros((pad, cin), jnp.float32)
        xp_scr[:pad, :] = z
        xp_scr[pad + T:, :] = z
    xp_scr[pad:pad + T, :] = x_ref[0].astype(jnp.float32)

    # In-kernel im2col: K shifted taps concatenated along channels.
    if K > 1:
        xcol = jnp.concatenate([xp_scr[k:k + T, :] for k in range(K)], axis=1)
    else:
        xcol = xp_scr[pad:pad + T, :]

    acc = jnp.dot(xcol.astype(jnp.bfloat16), w_ref[...],
                  preferred_element_type=jnp.float32)      # (T, Cout), f32 acc
    acc = (acc + b_ref[...]) * m_ref[0]                     # bias + mask
    o_ref[0] = jnp.maximum(acc, 0.0).astype(o_ref.dtype)    # ReLU


def masked_conv1d_relu(x, mask_f, w_flat, b, K):
    """x: (B, T, Cin), mask_f: (B, T, 1), w_flat: (K*Cin, Cout) bf16, b: (1, Cout)."""
    B, T, cin = x.shape
    cout = w_flat.shape[1]
    pad = K // 2
    kernel = functools.partial(_masked_conv_relu_kernel, K=K, T=T, pad=pad)
    # TODO(synk): at real sizes the very first layer (Cin=4) could instead be
    # left to XLA or channel-padded; im2col already deepens its contraction.
    return pl.pallas_call(
        kernel,
        out_shape=jax.ShapeDtypeStruct((B, T, cout), jnp.float32),
        grid=(B,),
        in_specs=[
            pl.BlockSpec((1, T, cin), lambda bi: (bi, 0, 0)),
            pl.BlockSpec((1, T, 1), lambda bi: (bi, 0, 0)),
            pl.BlockSpec((K * cin, cout), lambda bi: (0, 0)),
            pl.BlockSpec((1, cout), lambda bi: (0, 0)),
        ],
        out_specs=pl.BlockSpec((1, T, cout), lambda bi: (bi, 0, 0)),
        scratch_shapes=[pltpu.VMEM((T + 2 * pad, cin), jnp.float32)],
        compiler_params=pltpu.CompilerParams(
            dimension_semantics=("parallel",),
            vmem_limit_bytes=_VMEM_LIMIT),
    )(x, mask_f, w_flat, b)


# ----------------------------------------------------------------------------
# Pallas kernel 2: SGP block core (LN, depthwise branch, residual, GN stats)
# ----------------------------------------------------------------------------
def _sgp_core_kernel(x_ref, m_ref,
                     lnw_ref, lnb_ref,
                     psiw_ref, psib_ref, fcw_ref, fcb_ref,
                     cww_ref, cwb_ref, ckw_ref, ckb_ref,
                     gfw_ref, gfb_ref, gnw_ref, gnb_ref,
                     g_ref, gt_ref,
                     o3_ref, sc_ref, pad_scr, *, Kp, Kkw, pad_max, eps=1e-5):
    T, C = x_ref.shape[1], x_ref.shape[2]
    x = x_ref[0].astype(jnp.float32)                 # (T, C) (already downsampled)
    m = m_ref[0].astype(jnp.float32)                 # (T, 1)

    # LayerNorm over channels (torch LayerNorm on (B, C, T) normalizes dim=1).
    mu = jnp.mean(x, axis=1, keepdims=True)
    xc = x - mu
    var = jnp.mean(xc * xc, axis=1, keepdims=True)
    out = xc * lax.rsqrt(var + eps) * lnw_ref[...] + lnb_ref[...]

    # Zero only the halo rows every step (megacore-safe; the middle T rows are
    # fully overwritten below, so re-zeroing them would be wasted stores).
    if pad_max > 0:
        zhalo = jnp.zeros((pad_max, C), jnp.float32)
        pad_scr[:pad_max, :] = zhalo
        pad_scr[pad_max + T:, :] = zhalo
    pad_scr[pad_max:pad_max + T, :] = out

    # Fused depthwise taps: each shifted (T, C) slice is loaded once and FMA'd
    # into convkw always, and into psi/convw when the tap offset coincides.
    half_p = Kp // 2
    psiw, cww, ckw = psiw_ref[...], cww_ref[...], ckw_ref[...]
    psi_acc = jnp.zeros((T, C), jnp.float32)
    cw_acc = jnp.zeros((T, C), jnp.float32)
    ck_acc = jnp.zeros((T, C), jnp.float32)
    for k in range(Kkw):                              # pad_max == Kkw // 2
        d = k - pad_max                               # tap offset in [-pad, pad]
        tap = pad_scr[k:k + T, :]
        ck_acc = ck_acc + tap * ckw[k:k + 1, :]
        j = d + half_p                                # index into the Kp window
        if 0 <= j < Kp:
            psi_acc = psi_acc + tap * psiw[j:j + 1, :]
            cw_acc = cw_acc + tap * cww[j:j + 1, :]
    psi = psi_acc + psib_ref[...]
    convw = cw_acc + cwb_ref[...]
    convkw = ck_acc + ckb_ref[...]

    fc = out * fcw_ref[...] + fcb_ref[...]
    # Global pooling over all T (matches the PyTorch reference, which does not
    # mask the mean / GroupNorm statistics).
    gmean = jnp.mean(out, axis=0, keepdims=True)       # (1, C)
    phi = jnp.maximum(gmean * gfw_ref[...] + gfb_ref[...], 0.0)

    out3 = x * m + fc * phi + (convw + convkw) * psi + out
    o3_ref[0] = out3.astype(o3_ref.dtype)

    # GroupNorm(16, C): sums over T, group-pooled with ONE stacked (2, C)
    # one-hot matmul chain, folded into a per-channel affine (scale, shift).
    G = g_ref[...]                                     # (C, NG)
    Gt = gt_ref[...]                                   # (NG, C)
    NG = G.shape[1]
    n_per_group = (C // NG) * T
    s = jnp.sum(out3, axis=0, keepdims=True)           # (1, C)
    ss = jnp.sum(out3 * out3, axis=0, keepdims=True)   # (1, C)
    stats = jnp.concatenate([s, ss], axis=0)           # (2, C)
    gstats = jnp.dot(jnp.dot(stats, G, preferred_element_type=jnp.float32), Gt,
                     preferred_element_type=jnp.float32) * (1.0 / n_per_group)
    mean_c = gstats[0:1, :]
    var_c = jnp.maximum(gstats[1:2, :] - mean_c * mean_c, 0.0)   # clamp E[x^2]-m^2
    inv = lax.rsqrt(var_c + eps)
    scale = gnw_ref[...] * inv
    shift = gnb_ref[...] - mean_c * scale
    sc_ref[0] = jnp.concatenate([scale, shift], axis=0)          # (2, C)


def sgp_block_core(x, mask_f, p):
    B, T, C = x.shape
    Kp = p["psi_w"].shape[0]
    Kkw = p["convkw_w"].shape[0]
    assert Kkw >= Kp
    pad_max = Kkw // 2
    kernel = functools.partial(_sgp_core_kernel, Kp=Kp, Kkw=Kkw, pad_max=pad_max)

    param_arrays = [p["ln_w"], p["ln_b"],
                    p["psi_w"], p["psi_b"], p["fc_w"], p["fc_b"],
                    p["convw_w"], p["convw_b"], p["convkw_w"], p["convkw_b"],
                    p["gfc_w"], p["gfc_b"], p["gn_w"], p["gn_b"],
                    p["G"], p["Gt"]]

    def bspec(shape):
        return pl.BlockSpec(shape, lambda bi: (bi, 0, 0))

    def fspec(arr):
        nd = arr.ndim
        return pl.BlockSpec(arr.shape, lambda bi, nd=nd: (0,) * nd)

    # TODO(synk): grid-invariant params are still double-buffered by the default
    # pipeline (pl.Buffered(1) would halve their VMEM footprint at real sizes).
    # TODO(synk): for very long T on v7x this per-batch full-T core would need a
    # stats/apply T-tiled decomposition; the MLP stage below is already T-tiled.
    out3, scsh = pl.pallas_call(
        kernel,
        out_shape=(jax.ShapeDtypeStruct((B, T, C), jnp.float32),
                   jax.ShapeDtypeStruct((B, 2, C), jnp.float32)),
        grid=(B,),
        in_specs=[bspec((1, T, C)), bspec((1, T, 1))]
                 + [fspec(a) for a in param_arrays],
        out_specs=(bspec((1, T, C)), bspec((1, 2, C))),
        scratch_shapes=[pltpu.VMEM((T + 2 * pad_max, C), jnp.float32)],
        compiler_params=pltpu.CompilerParams(
            dimension_semantics=("parallel",),
            vmem_limit_bytes=_VMEM_LIMIT),
    )(x, mask_f, *param_arrays)
    return out3, scsh


# ----------------------------------------------------------------------------
# Pallas kernel 3: SGP block MLP (GN affine -> 1x1 conv -> GELU -> 1x1 conv
# + residual), T-tiled, bf16 MXU matmuls.
# ----------------------------------------------------------------------------
def _gelu_tanh(x):
    # TODO(synk): tanh-form GELU (EUP tanh) vs torch nn.GELU's exact erf form;
    # max abs difference ~3e-4, sanctioned by the perf review.
    c = 0.7978845608028654  # sqrt(2/pi)
    return 0.5 * x * (1.0 + jnp.tanh(c * (x + 0.044715 * (x * x * x))))


def _sgp_mlp_kernel(o3_ref, sc_ref, w1_ref, b1_ref, w2_ref, b2_ref, o_ref):
    out3 = o3_ref[0].astype(jnp.float32)          # (tT, C)
    sc = sc_ref[0]                                # (2, C): [scale; shift]
    gn = out3 * sc[0:1, :] + sc[1:2, :]
    h = jnp.dot(gn.astype(jnp.bfloat16), w1_ref[...],
                preferred_element_type=jnp.float32) + b1_ref[...]
    h = _gelu_tanh(h)
    y = jnp.dot(h.astype(jnp.bfloat16), w2_ref[...],
                preferred_element_type=jnp.float32) + b2_ref[...]
    o_ref[0] = (out3 + y).astype(o_ref.dtype)


def _pick_time_tile(T, max_tile=512):
    for c in (512, 256, 128, 64, 32, 16, 8):
        if c <= max_tile and c <= T and T % c == 0:
            return c
    return T  # fall back to the full extent (still a legal block shape)


def sgp_block_mlp(out3, scsh, p):
    B, T, C = out3.shape
    H = p["mlp_w1"].shape[1]
    tT = _pick_time_tile(T)
    nT = T // tT
    return pl.pallas_call(
        _sgp_mlp_kernel,
        out_shape=jax.ShapeDtypeStruct((B, T, C), jnp.float32),
        grid=(B, nT),
        in_specs=[
            pl.BlockSpec((1, tT, C), lambda b, t: (b, t, 0)),
            pl.BlockSpec((1, 2, C), lambda b, t: (b, 0, 0)),
            pl.BlockSpec((C, H), lambda b, t: (0, 0)),
            pl.BlockSpec((1, H), lambda b, t: (0, 0)),
            pl.BlockSpec((H, C), lambda b, t: (0, 0)),
            pl.BlockSpec((1, C), lambda b, t: (0, 0)),
        ],
        out_specs=pl.BlockSpec((1, tT, C), lambda b, t: (b, t, 0)),
        compiler_params=pltpu.CompilerParams(
            dimension_semantics=("parallel", "parallel"),
            vmem_limit_bytes=_VMEM_LIMIT),
    )(out3, scsh, p["mlp_w1"], p["mlp_b1"], p["mlp_w2"], p["mlp_b2"])


# ----------------------------------------------------------------------------
# JAX glue (cheap ops): max-pool downsample, nearest mask interpolation
# ----------------------------------------------------------------------------
def maxpool1d_torch(x, n_ds_stride):
    # torch nn.MaxPool1d(kernel=n_ds_stride+1, stride=n_ds_stride,
    #                    padding=(n_ds_stride+1)//2)  on (B, T, C) layout.
    ks = n_ds_stride + 1
    pad = (n_ds_stride + 1) // 2
    return lax.reduce_window(
        x, jnp.array(-jnp.inf, dtype=x.dtype), lax.max,
        window_dimensions=(1, ks, 1),
        window_strides=(1, n_ds_stride, 1),
        padding=((0, 0), (pad, pad), (0, 0)))


def interp_nearest(mask_f, size):
    # F.interpolate(mode='nearest') on the time axis of (B, T, 1).
    T = mask_f.shape[1]
    idx = (jnp.arange(size) * T) // size
    return mask_f[:, idx, :]


def sgp_block(x, mask_bool, p, n_ds_stride):
    B, T, C = x.shape
    if n_ds_stride > 1:
        # TODO(synk): fuse the max-pool + nearest mask interp into the core
        # kernel to save one (B,T,C) HBM round trip per pyramid level.
        x = maxpool1d_torch(x, n_ds_stride)
        t_new = T // n_ds_stride + T % n_ds_stride
    else:
        t_new = T
    assert x.shape[1] == t_new
    mask_f = interp_nearest(mask_bool.astype(jnp.float32), t_new)
    out3, scsh = sgp_block_core(x, mask_f, p)
    out = sgp_block_mlp(out3, scsh, p)
    return out, mask_f.astype(bool)


def sgp_backbone_forward(x, mask_bool, params, scale_factor=2):
    # x: (B, T, n_in), mask_bool: (B, T, 1)
    mask_f = mask_bool.astype(jnp.float32)
    K = params["embd_ks"]
    for (w, b) in params["embd"]:                       # MaskedConv1D + ReLU, stride 1
        x = masked_conv1d_relu(x, mask_f, w, b, K)
    for p in params["stem"]:
        x, mask_bool = sgp_block(x, mask_bool, p, n_ds_stride=1)
    out_feats, out_masks = (x,), (mask_bool,)
    for p in params["branch"]:
        x, mask_bool = sgp_block(x, mask_bool, p, n_ds_stride=scale_factor)
        out_feats += (x,)
        out_masks += (mask_bool,)
    return out_feats, out_masks


# ----------------------------------------------------------------------------
# Deterministic synthetic parameters (shapes follow the PyTorch __init__)
# ----------------------------------------------------------------------------
def make_params(key, n_in, n_embd, sgp_mlp_dim, n_embd_ks, arch, sgp_win_size, k=1.5):
    std = 0.2
    keys = iter(jax.random.split(key, 256))
    zeros = lambda *s: jnp.zeros(s, jnp.float32)
    ones = lambda *s: jnp.ones(s, jnp.float32)
    rnd = lambda *s: std * jax.random.normal(next(keys), s, jnp.float32)

    params = {"embd": [], "stem": [], "branch": [], "embd_ks": n_embd_ks}
    for i in range(arch[0]):
        cin = n_in if i == 0 else n_embd
        # im2col-flattened, bf16 (MXU-native) conv weight: (K*Cin, Cout)
        w = rnd(n_embd_ks, cin, n_embd).reshape(n_embd_ks * cin, n_embd)
        params["embd"].append((w.astype(jnp.bfloat16), zeros(1, n_embd)))

    ng = 16
    gs = n_embd // ng
    G = (jnp.arange(n_embd)[:, None] // gs == jnp.arange(ng)[None, :]).astype(jnp.float32)

    def block_params(ks):
        up = round((ks + 1) * k)
        up = up + 1 if up % 2 == 0 else up
        return {
            "ln_w": ones(1, n_embd), "ln_b": zeros(1, n_embd),
            "psi_w": rnd(ks, n_embd), "psi_b": zeros(1, n_embd),
            "fc_w": rnd(1, n_embd), "fc_b": zeros(1, n_embd),
            "convw_w": rnd(ks, n_embd), "convw_b": zeros(1, n_embd),
            "convkw_w": rnd(up, n_embd), "convkw_b": zeros(1, n_embd),
            "gfc_w": rnd(1, n_embd), "gfc_b": zeros(1, n_embd),
            "gn_w": ones(1, n_embd), "gn_b": zeros(1, n_embd),
            "G": G, "Gt": G.T,
            "mlp_w1": rnd(n_embd, sgp_mlp_dim).astype(jnp.bfloat16),
            "mlp_b1": zeros(1, sgp_mlp_dim),
            "mlp_w2": rnd(sgp_mlp_dim, n_embd).astype(jnp.bfloat16),
            "mlp_b2": zeros(1, n_embd),
        }

    for _ in range(arch[1]):
        params["stem"].append(block_params(1))
    for i in range(arch[2]):
        params["branch"].append(block_params(sgp_win_size[1 + i]))
    return params


# ----------------------------------------------------------------------------
if __name__ == "__main__":
    # NOTE: real TriDet uses n_embd=512 / mlp=1024 (lane-aligned multiples of
    # 128); the demo stays small per instructions (n_embd divisible by 16 for
    # GroupNorm).  T=48 exercises the multi-tile MLP path (tiles of 16 / 8).
    B, n_in, n_embd, T = 2, 4, 32, 48
    sgp_mlp_dim, n_embd_ks = 64, 3
    arch = (2, 2, 2)                             # 2 embd convs, 2 stem, 2 branch levels
    sgp_win_size = [1, 3, 3]                     # len == 1 + arch[2]
    scale_factor = 2

    key = jax.random.PRNGKey(0)
    kx, kp = jax.random.split(key)
    x = jax.random.normal(kx, (B, T, n_in), jnp.float32)          # layout: (B, T, C)
    lengths = jnp.array([T, T - 7])
    mask = jnp.arange(T)[None, :, None] < lengths[:, None, None]  # (B, T, 1) bool

    params = make_params(kp, n_in, n_embd, sgp_mlp_dim, n_embd_ks, arch, sgp_win_size)

    feats, masks = sgp_backbone_forward(x, mask, params, scale_factor=scale_factor)
    feats = jax.block_until_ready(feats)
    masks = jax.block_until_ready(masks)

    expected_t = [T, T // 2, T // 4]
    assert len(feats) == 1 + arch[2] and len(masks) == 1 + arch[2]
    for f, m, t in zip(feats, masks, expected_t):
        assert f.shape == (B, t, n_embd), f.shape
        assert m.shape == (B, t, 1), m.shape
        assert bool(jnp.all(jnp.isfinite(f)))
    print("KERNEL_OK")
</pallas_src>

<mosaic_0001>
module attributes {stable_mosaic.version = 11 : i64} {
  func.func @_masked_conv_relu_kernel(%arg0: i32, %arg1: memref<1x48x4xf32, #tpu.memory_space<vmem>>, %arg2: memref<1x48x1xf32, #tpu.memory_space<vmem>>, %arg3: memref<12x32xbf16, #tpu.memory_space<vmem>>, %arg4: memref<1x32xf32, #tpu.memory_space<vmem>>, %arg5: memref<1x48x32xf32, #tpu.memory_space<vmem>>, %arg6: memref<50x4xf32, #tpu.memory_space<vmem>>) attributes {dimension_semantics = [#tpu.dimension_semantics<parallel>], iteration_bounds = array<i64: 2>, scalar_prefetch = 0 : i64, scratch_operands = 1 : i64, tpu.core_type = #tpu.core_type<tc>, window_params = [{transform_indices = @transform_0, window_bounds = array<i64: 1, 48, 4>}, {transform_indices = @transform_1, window_bounds = array<i64: 1, 48, 1>}, {pipeline_mode = #tpu.pipeline_mode<synchronous>, transform_indices = @transform_2, window_bounds = array<i64: 12, 32>}, {pipeline_mode = #tpu.pipeline_mode<synchronous>, transform_indices = @transform_3, window_bounds = array<i64: 1, 32>}, {transform_indices = @transform_4, window_bounds = array<i64: 1, 48, 32>}]} {
    %cst = arith.constant 0.000000e+00 : f32
    %0 = vector.broadcast %cst : f32 to vector<1x4xf32>
    %c0 = arith.constant 0 : index
    %c0_0 = arith.constant 0 : index
    %1 = vector.load %arg6[%c0, %c0_0] : memref<50x4xf32, #tpu.memory_space<vmem>>, vector<1x4xf32>
    tpu.vector_store %arg6[%c0, %c0_0], %0 {strides = array<i32>} : memref<50x4xf32, #tpu.memory_space<vmem>>, vector<1x4xf32>,
    %c49 = arith.constant 49 : index
    %c0_1 = arith.constant 0 : index
    %2 = vector.load %arg6[%c49, %c0_1] : memref<50x4xf32, #tpu.memory_space<vmem>>, vector<1x4xf32>
    tpu.vector_store %arg6[%c49, %c0_1], %0 {strides = array<i32>} : memref<50x4xf32, #tpu.memory_space<vmem>>, vector<1x4xf32>,
    %c0_2 = arith.constant 0 : index
    %c0_3 = arith.constant 0 : index
    %c0_4 = arith.constant 0 : index
    %3 = vector.load %arg1[%c0_2, %c0_3, %c0_4] : memref<1x48x4xf32, #tpu.memory_space<vmem>>, vector<1x48x4xf32>
    %4 = vector.shape_cast %3 : vector<1x48x4xf32> to vector<48x4xf32>
    %c1 = arith.constant 1 : index
    %c0_5 = arith.constant 0 : index
    %5 = vector.load %arg6[%c1, %c0_5] : memref<50x4xf32, #tpu.memory_space<vmem>>, vector<48x4xf32>
    tpu.vector_store %arg6[%c1, %c0_5], %4 {strides = array<i32>} : memref<50x4xf32, #tpu.memory_space<vmem>>, vector<48x4xf32>,
    %c0_6 = arith.constant 0 : index
    %c0_7 = arith.constant 0 : index
    %6 = vector.load %arg6[%c0_6, %c0_7] : memref<50x4xf32, #tpu.memory_space<vmem>>, vector<48x4xf32>
    %c1_8 = arith.constant 1 : index
    %c0_9 = arith.constant 0 : index
    %7 = vector.load %arg6[%c1_8, %c0_9] : memref<50x4xf32, #tpu.memory_space<vmem>>, vector<48x4xf32>
    %c2 = arith.constant 2 : index
    %c0_10 = arith.constant 0 : index
    %8 = vector.load %arg6[%c2, %c0_10] : memref<50x4xf32, #tpu.memory_space<vmem>>, vector<48x4xf32>
    %9 = tpu.concatenate %6, %7, %8 in 1 : vector<48x4xf32>, vector<48x4xf32>, vector<48x4xf32> -> vector<48x12xf32>
    %10 = arith.truncf %9 : vector<48x12xf32> to vector<48x12xbf16>
    %c0_11 = arith.constant 0 : index
    %c0_12 = arith.constant 0 : index
    %11 = vector.load %arg3[%c0_11, %c0_12] : memref<12x32xbf16, #tpu.memory_space<vmem>>, vector<12x32xbf16>
    %cst_13 = arith.constant dense<0.000000e+00> : vector<48x32xf32>
    %12 = tpu.matmul %10, %11, %cst_13 {dimension_numbers = #tpu.dot_dimension_numbers<[1], [0], [0], [1], [0, 0, 1, 1], [], []>} : vector<48x12xbf16>, vector<12x32xbf16>, vector<48x32xf32> -> vector<48x32xf32>
    %c0_14 = arith.constant 0 : index
    %c0_15 = arith.constant 0 : index
    %13 = vector.load %arg4[%c0_14, %c0_15] : memref<1x32xf32, #tpu.memory_space<vmem>>, vector<1x32xf32>
    %14 = vector.broadcast %13 : vector<1x32xf32> to vector<48x32xf32>
    %15 = arith.addf %12, %14 : vector<48x32xf32>
    %c0_16 = arith.constant 0 : index
    %c0_17 = arith.constant 0 : index
    %c0_18 = arith.constant 0 : index
    %16 = vector.load %arg2[%c0_16, %c0_17, %c0_18] : memref<1x48x1xf32, #tpu.memory_space<vmem>>, vector<1x48x1xf32>
    %17 = vector.shape_cast %16 : vector<1x48x1xf32> to vector<48x1xf32>
    %18 = vector.broadcast %17 : vector<48x1xf32> to vector<48x32xf32>
    %19 = arith.mulf %15, %18 : vector<48x32xf32>
    %cst_19 = arith.constant 0.000000e+00 : f32
    %20 = vector.broadcast %cst_19 : f32 to vector<48x32xf32>
    %21 = arith.maximumf %19, %20 : vector<48x32xf32>
    %c0_20 = arith.constant 0 : index
    %c0_21 = arith.constant 0 : index
    %c0_22 = arith.constant 0 : index
    %22 = vector.load %arg5[%c0_20, %c0_21, %c0_22] : memref<1x48x32xf32, #tpu.memory_space<vmem>>, vector<1x48x32xf32>
    %23 = vector.shape_cast %22 : vector<1x48x32xf32> to vector<48x32xf32>
    %24 = vector.shape_cast %21 : vector<48x32xf32> to vector<1x48x32xf32>
    tpu.vector_store %arg5[%c0_20, %c0_21, %c0_22], %24 {strides = array<i32>} : memref<1x48x32xf32, #tpu.memory_space<vmem>>, vector<1x48x32xf32>,
    return
  }
  func.func @transform_0(%arg0: i32) -> (i32, i32, i32) {
    %c0_i32 = arith.constant 0 : i32
    %c0_i32_0 = arith.constant 0 : i32
    %c0_i32_1 = arith.constant 0 : i32
    return %arg0, %c0_i32, %c0_i32_0 : i32, i32, i32
  }
  func.func @transform_1(%arg0: i32) -> (i32, i32, i32) {
    %c0_i32 = arith.constant 0 : i32
    %c0_i32_0 = arith.constant 0 : i32
    %c0_i32_1 = arith.constant 0 : i32
    return %arg0, %c0_i32, %c0_i32_0 : i32, i32, i32
  }
  func.func @transform_2(%arg0: i32) -> (i32, i32) {
    %c0_i32 = arith.constant 0 : i32
    %c0_i32_0 = arith.constant 0 : i32
    %c0_i32_1 = arith.constant 0 : i32
    return %c0_i32, %c0_i32_0 : i32, i32
  }
  func.func @transform_3(%arg0: i32) -> (i32, i32) {
    %c0_i32 = arith.constant 0 : i32
    %c0_i32_0 = arith.constant 0 : i32
    %c0_i32_1 = arith.constant 0 : i32
    return %c0_i32, %c0_i32_0 : i32, i32
  }
  func.func @transform_4(%arg0: i32) -> (i32, i32, i32) {
    %c0_i32 = arith.constant 0 : i32
    %c0_i32_0 = arith.constant 0 : i32
    %c0_i32_1 = arith.constant 0 : i32
    return %arg0, %c0_i32, %c0_i32_0 : i32, i32, i32
  }
}

</mosaic_0001>

<bundles_post_ra>
// kernel: tpu_custom_call.1
= control target key start
LH: loop header
LB: loop body
LE: loop exit
PB: predicated region body
PF: predicated region fallthrough
CT: control target
= control target key end

     0   :  { %s644_s15 = smov 0   ;;  %s720_s0 = inlined_call_operand.vmem [shape: f32[2,48,4], index: 0, kind: input, shape index: {}]   ;;  %s721_s1 = inlined_call_operand.vmem [shape: f32[2,48,1], index: 1, kind: input, shape index: {}]   ;;  %s722_s2 = inlined_call_operand.vmem [shape: bf16[12,32], index: 2, kind: input, shape index: {}]   ;;  %s723_s3 = inlined_call_operand.vmem [shape: f32[1,32], index: 3, kind: input, shape index: {}]   ;;  %s724_s4 = inlined_call_operand.vmem [shape: f32[2,48,32], index: 4, kind: output, shape index: {}]  }
   0x1 LB: > { %s524_s16 = sadd.s32 4294967295, %s612_s15   ;;  %p528_p0 = scmp.ge.s32.totalorder %s612_s15, 1  ;;  %s612_s15 = sphi %s644_s15, %s14_s15  }
   0x2   : > { %p172_p1 = scmp.lt.s32.totalorder %s612_s15, 3 }
   0x4   : > { %p173_p2 = pnand %p528_p0, %p172_p1 }
   0x5   : > { %p203_p3 = scmp.lt.s32.totalorder (!%p173_p2), %s524_s16, 1  ;;  %vm219_vm0 = vcmask (!%p173_p2), 24576   ;;  %v614_v0 = vmov (!%p173_p2), 0.0   ;;  %vm228_vm1 = vcmask (!%p173_p2), 31744   ;;  %v605_v7 = vld [vmem:[%s722_s2] sm:$0x3f] (!%p173_p2)  }
   0x6   : > { %176 = sbr.rel (%p173_p2) target bundleno = 381 (0x17d), region = 36  ;;  %220 = vst.msk [vmem:[#allocation2] sm:$0x1] (!%p173_p2), %vm219_vm0, %v614_v0  ;;  %221 = vst.msk [vmem:[#allocation2 + $0x31] sm:$0x1] (!%p173_p2), %vm219_vm0, %v614_v0  ;;  %557 = vmatprep.subr.bf16.mxu1 (!%p173_p2), %v614_v0  ;;  %543 = vmatprep.subr.bf16.mxu0 (!%p173_p2), %v614_v0  ;;  %vm341_vm2 = vcmask (!%p173_p2), 1045504  }
   0x7   : > { %v343_v8 = vsel (!%p173_p2), %vm341_vm2, %v605_v7, 0  ;;  %vm615_vm3 = vmmov (!%p173_p2), 0   ;;  %s616_s23 = smov (!%p173_p2), 4   ;;  %s617_s24 = smov (!%p173_p2), 8   ;;  %v618_v27 = vmov (!%p173_p2), 0   ;;  %vm307_vm4 = vcmask (!%p173_p2), 64512  }
   0x8   : > { %558 = vmatpush3.bf16.msra.mxu1 (!%p173_p2), %v343_v8  ;;  %544 = vmatpush3.bf16.msra.mxu0 (!%p173_p2), %v343_v8  ;;  %vm331_vm5 = vcmask (!%p173_p2), 97280   ;;  %vm450_vm6 = vcmask (!%p173_p2), 261120  }
   0x9   : > { %549 = vmatprep.mubr.msk.bf16.mxu1 (!%p173_p2), %vm615_vm3, %v614_v0  ;;  %545 = vmatprep.mubr.msk.bf16.mxu0 (!%p173_p2), %vm615_vm3, %v614_v0 }
   0xa   : > { %603 = vset.pattern.permute.xlu0 (!%p173_p2), %v618_v27  ;;  %604 = vset.pattern.permute.xlu1 (!%p173_p2), %v618_v27 }
   0xd   : > { %s726_s16 = smov (!%p203_p3, %s524_s16), 1 }
   0xe   : > { %s656_s17 = smul.u32 48, %s726_s16 }
  0x10   : > { %s207_s20 = scalar_lea.vmem %s720_s0, %s656_s17  ;;  %s212_s27 = scalar_lea.vmem %s721_s1, %s656_s17 }
  0x11   : > { %v224_v1 = vld [vmem:[%s207_s20 + $0x10] sm:$0xff]  ;;  %v225_v2 = vld [vmem:[%s207_s20 + $0x18] sm:$0xff]  ;;  %v222_v3 = vld [vmem:[%s207_s20] sm:$0xff]  ;;  %s703_s6 = scalar_lea.vmem %s724_s4, %s656_s17 }
  0x12   : > { %231 = vst.msk [vmem:[#allocation2 + $0x11] sm:$0xff] %vm228_vm1, %v224_v1  ;;  %232 = vst.msk [vmem:[#allocation2 + $0x19] sm:$0xff] %vm228_vm1, %v225_v2  ;;  %v223_v4 = vld [vmem:[%s207_s20 + $0x8] sm:$0xff]  ;;  %v226_v5 = vld [vmem:[%s207_s20 + $0x20] sm:$0xff] }
  0x13   : > { %229 = vst.msk [vmem:[#allocation2 + $0x1] sm:$0xff] %vm228_vm1, %v222_v3  ;;  %v227_v6 = vld [vmem:[%s207_s20 + $0x28] sm:$0xff]  ;;  %230 = vst.msk [vmem:[#allocation2 + $0x9] sm:$0xff] %vm228_vm1, %v223_v4  ;;  %v402_v28 = vld [vmem:[%s212_s27] sm:$0xff] }
  0x14   : > { %233 = vst.msk [vmem:[#allocation2 + $0x21] sm:$0xff] %vm228_vm1, %v226_v5  ;;  %234 = vst.msk [vmem:[#allocation2 + $0x29] sm:$0xff] %vm228_vm1, %v227_v6  ;;  %v403_v29 = vld [vmem:[%s212_s27 + $0x8] sm:$0xff]  ;;  %v405_v30 = vld [vmem:[%s212_s27 + $0x18] sm:$0xff] }
  0x15   : > { %v404_v31 = vld [vmem:[%s212_s27 + $0x10] sm:$0xff]  ;;  %v407_v32 = vld [vmem:[%s212_s27 + $0x28] sm:$0xff]  ;;  %v406_v33 = vld [vmem:[%s212_s27 + $0x20] sm:$0xff] }
  0x19   : > { %v243_v9 = vld [vmem:[#allocation2 + $0x11] sm:$0xff]  ;;  %v244_v10 = vld [vmem:[#allocation2 + $0x19] sm:$0xff] }
  0x1a   : > { %v241_v11 = vld [vmem:[#allocation2 + $0x1] sm:$0xff]  ;;  %v573_v12 = vpack.i.bf16 %v244_v10, %v243_v9  ;;  %v242_v13 = vld [vmem:[#allocation2 + $0x9] sm:$0xff]  ;;  %v249_v14 = vld [vmem:[#allocation2 + $0x12] sm:$0xff] }
  0x1b   : > { %v250_v15 = vld [vmem:[#allocation2 + $0x1a] sm:$0xff]  ;;  %v583_v16 = vpack.i.bf16 %v242_v13, %v241_v11  ;;  %v246_v18 = vld [vmem:[#allocation2 + $0x29] sm:$0xff] }
  0x1c   : > { %v245_v17 = vld [vmem:[#allocation2 + $0x21] sm:$0xff]  ;;  %574 = vrot.lane.b32.xlu0 %v573_v12, %s616_s23  ;;  %v578_v19 = vpack.i.bf16 %v250_v15, %v249_v14  ;;  %v248_v22 = vld [vmem:[#allocation2 + $0xa] sm:$0xff]  ;;  %v238_v39 = vld [vmem:[#allocation2 + $0x18] sm:$0xff] }
  0x1d   : > { %584 = vrot.lane.b32.xlu1 %v583_v16, %s616_s23  ;;  %v588_v20 = vpack.i.bf16 %v246_v18, %v245_v17  ;;  %v247_v21 = vld [vmem:[#allocation2 + $0x2] sm:$0xff]  ;;  %v252_v24 = vld [vmem:[#allocation2 + $0x2a] sm:$0xff]  ;;  %v532_v12 = vld [vmem:[%s723_s3] ss:$0 sm:$0xff] }
  0x1e   : > { %v251_v23 = vld [vmem:[#allocation2 + $0x22] sm:$0xff]  ;;  %v593_v25 = vpack.i.bf16 %v248_v22, %v247_v21  ;;  %v237_v38 = vld [vmem:[#allocation2 + $0x10] sm:$0xff] }
  0x1f   : > { %v598_v26 = vpack.i.bf16 %v252_v24, %v251_v23  ;;  %v235_v48 = vld [vmem:[#allocation2] sm:$0xff]  ;;  %v236_v49 = vld [vmem:[#allocation2 + $0x8] sm:$0xff] }
  0x20   : > { %579 = vrot.lane.b32.xlu0 %v578_v19, %s617_s24  ;;  %v239_v54 = vld [vmem:[#allocation2 + $0x20] sm:$0xff]  ;;  %v240_v55 = vld [vmem:[#allocation2 + $0x28] sm:$0xff] }
  0x21   : > { %589 = vrot.lane.b32.xlu1 %v588_v20, %s616_s23 }
  0x24   : > { %594 = vrot.lane.b32.xlu0 %v593_v25, %s617_s24 }
  0x25   : > { %599 = vrot.lane.b32.xlu1 %v598_v26, %s617_s24 }
  0x28   : > { %410 = vperm.xlu0 %603, %v402_v28  }
  0x29   : > { %415 = vperm.xlu1 %604, %v403_v29  }
  0x2c   : > { %425 = vperm.xlu0 %603, %v405_v30  }
  0x2d   : > { %420 = vperm.xlu1 %604, %v404_v31  }
  0x30   : > { %435 = vperm.xlu0 %603, %v407_v32  }
  0x31   : > { %430 = vperm.xlu1 %604, %v406_v33  }
  0x8e   : > { %v575_v34 = vpop.permute.xlu0 %574 }
  0x8f   : > { %v585_v35 = vpop.permute.xlu1 %584  ;;  %v577_v36 = vunpack.i.h.bf16 %v575_v34  ;;  %v576_v37 = vunpack.i.l.bf16 %v575_v34 }
  0x90   : > { %v587_v41 = vunpack.i.h.bf16 %v585_v35  ;;  %v586_v42 = vunpack.i.l.bf16 %v585_v35 }
  0x91   : > { %v303_v46 = vsel %vm228_vm1, %v237_v38, %v576_v37  ;;  %v304_v47 = vsel %vm228_vm1, %v238_v39, %v577_v36 }
  0x92   : > { %v580_v40 = vpop.permute.xlu0 %579  ;;  %v301_v58 = vsel %vm228_vm1, %v235_v48, %v586_v42  ;;  %v302_v59 = vsel %vm228_vm1, %v236_v49, %v587_v41 }
  0x93   : > { %v582_v43 = vunpack.i.h.bf16 %v580_v40  ;;  %v581_v44 = vunpack.i.l.bf16 %v580_v40  ;;  %v590_v45 = vpop.permute.xlu1 %589 }
  0x94   : > { %v592_v50 = vunpack.i.h.bf16 %v590_v45  ;;  %v591_v51 = vunpack.i.l.bf16 %v590_v45 }
  0x95   : > { %v310_v52 = vsel %vm307_vm4, %v303_v46, %v581_v44  ;;  %v311_v53 = vsel %vm307_vm4, %v304_v47, %v582_v43 }
  0x96   : > { %v315_v56 = vpack.c.bf16 %v311_v53, %v310_v52  ;;  %v595_v57 = vpop.permute.xlu0 %594  ;;  %v306_v63 = vsel %vm228_vm1, %v240_v55, %v592_v50  ;;  %v305_v1 = vsel %vm228_vm1, %v239_v54, %v591_v51 }
  0x97   : > { %v597_v60 = vunpack.i.h.bf16 %v595_v57  ;;  %v596_v61 = vunpack.i.l.bf16 %v595_v57  ;;  %v600_v62 = vpop.permute.xlu1 %599 }
  0x98   : > { %v602_v2 = vunpack.i.h.bf16 %v600_v62  ;;  %v601_v3 = vunpack.i.l.bf16 %v600_v62  ;;  %550 = vmatmul.mubr.msk.bf16.vlgmr.msra.gmra.mrb[0].mxu1 %vm331_vm5, %v315_v56 }
  0x99   : > { %v308_v4 = vsel %vm307_vm4, %v301_v58, %v596_v61  ;;  %v309_v5 = vsel %vm307_vm4, %v302_v59, %v597_v60  ;;  %553 = vmatprep.mubr.msk.bf16.mxu1 %vm615_vm3, %v614_v0 }
  0x9a   : > { %v314_v6 = vpack.c.bf16 %v309_v5, %v308_v4  ;;  %v312_v7 = vsel %vm307_vm4, %v305_v1, %v601_v3  ;;  %v313_v8 = vsel %vm307_vm4, %v306_v63, %v602_v2 }
  0x9b   : > { %v316_v9 = vpack.c.bf16 %v313_v8, %v312_v7 }
  0x9c   : > { %546 = vmatmul.mubr.msk.bf16.vlgmr.msra.gmra.mrb[0].mxu0 %vm331_vm5, %v314_v6 }
  0xa0   : > { %554 = vmatmul.mubr.msk.bf16.gmra.mrb[4].mxu1 %vm331_vm5, %v316_v9 }
  0xa7   : > { %v411_v11 = vpop.permute.xlu0 %410 }
  0xa8   : > { %v416_v10 = vpop.permute.xlu1 %415 }
  0xab   : > { %v426_v20 = vpop.permute.xlu0 %425 }
  0xac   : > { %v421_v15 = vpop.permute.xlu1 %420 }
  0xaf   : > { %v436_v42 = vpop.permute.xlu0 %435 }
  0xb0   : > { %v431_v36 = vpop.permute.xlu1 %430 }
 0x16b   : > { %v387_v13 = vpop.f32.mrb[0].mxu1 }
 0x16c   : > { %v388_v14 = vadd.f32 %v532_v12, %v387_v13  ;;  %v551_v0 = vpop.f32.mrb[1].mxu1 }
 0x16d   : > { %v390_v16 = vpop.f32.mrb[2].mxu1 }
 0x16e   : > { %v440_v17 = vmul.f32 %v421_v15, %v388_v14  ;;  %v391_v18 = vadd.f32 %v532_v12, %v390_v16  ;;  %v552_v19 = vpop.f32.mrb[3].mxu1 }
 0x16f   : > { %v379_v21 = vpop.f32.mrb[0].mxu0 }
 0x170   : > { %v446_v22 = vmax.f32 %v440_v17, 0.0  ;;  %v441_v23 = vmul.f32 %v426_v20, %v391_v18  ;;  %v380_v24 = vadd.f32 %v532_v12, %v379_v21  ;;  %v547_v25 = vpop.f32.mrb[1].mxu0 }
 0x171   : > { %v382_v26 = vpop.f32.mrb[2].mxu0 }
 0x172   : > { %453 = vst.msk [vmem:[%s703_s6 + $0x10] sm:$0xff] %vm450_vm6, %v446_v22  ;;  %v447_v27 = vmax.f32 %v441_v23, 0.0  ;;  %v438_v28 = vmul.f32 %v411_v11, %v380_v24  ;;  %v383_v29 = vadd.f32 %v532_v12, %v382_v26  ;;  %v548_v30 = vpop.f32.mrb[3].mxu0 }
 0x173   : > { %v395_v31 = vpop.f32.mrb[4].mxu1 }
 0x174   : > { %454 = vst.msk [vmem:[%s703_s6 + $0x18] sm:$0xff] %vm450_vm6, %v447_v27  ;;  %v444_v32 = vmax.f32 %v438_v28, 0.0  ;;  %v439_v33 = vmul.f32 %v416_v10, %v383_v29  ;;  %v396_v34 = vadd.f32 %v532_v12, %v395_v31  ;;  %v555_v35 = vpop.f32.mrb[5].mxu1 }
 0x175   : > { %v398_v37 = vpop.f32.mrb[6].mxu1 }
 0x176   : > { %451 = vst.msk [vmem:[%s703_s6] sm:$0xff] %vm450_vm6, %v444_v32  ;;  %v445_v38 = vmax.f32 %v439_v33, 0.0  ;;  %v442_v39 = vmul.f32 %v431_v36, %v396_v34  ;;  %v399_v40 = vadd.f32 %v532_v12, %v398_v37  ;;  %v556_v41 = vpop.f32.mrb[7].mxu1 }
 0x178   : > { %452 = vst.msk [vmem:[%s703_s6 + $0x8] sm:$0xff] %vm450_vm6, %v445_v38  ;;  %v448_v43 = vmax.f32 %v442_v39, 0.0  ;;  %v443_v44 = vmul.f32 %v436_v42, %v399_v40 }
 0x17a   : > { %455 = vst.msk [vmem:[%s703_s6 + $0x20] sm:$0xff] %vm450_vm6, %v448_v43  ;;  %v449_v45 = vmax.f32 %v443_v44, 0.0 }
 0x17c   : > { %456 = vst.msk [vmem:[%s703_s6 + $0x28] sm:$0xff] %vm450_vm6, %v449_v45 }
 0x17d PF: > { %s14_s15 = sadd.s32 1, %s612_s15  }
 0x17e   : > { %p11_p4 = scmp.ge.s32.totalorder %s14_s15, 4  }
 0x180   :  { %13 = sbr.rel (!%p11_p4) target bundleno = 1 (0x1), region = 69 }

</bundles_post_ra>
